<compile_context>
chip_gen: v5e
topology: v5e:2x2
jax: 0.10.0
libtpu: 0.0.40
codegen_flags: <defaults>
</compile_context>

<pallas_src>
import jax
import jax.numpy as jnp
from jax import lax
from jax.experimental import pallas as pl
from jax.experimental.pallas import tpu as pltpu


def _round_up(x, m):
    return ((x + m - 1) // m) * m


def _pick_tile(dim, cap, mult):
    """Largest tile <= cap that divides `dim` and is a multiple of `mult`.
    Falls back to the full dim (always a legal block)."""
    if dim <= cap:
        return dim
    t = (cap // mult) * mult
    while t >= mult:
        if dim % t == 0:
            return t
        t -= mult
    return dim


def _compiler_params(bytes_needed, dimension_semantics=None):
    limit = int(min(64 * 2**20, max(8 * 2**20, 2 * bytes_needed)))
    if dimension_semantics is None:
        return pltpu.CompilerParams(vmem_limit_bytes=limit)
    return pltpu.CompilerParams(dimension_semantics=dimension_semantics,
                                vmem_limit_bytes=limit)


# ---------------------------------------------------------------------------
# Stages 1 & 3: generic tiled GEMM + bias (bf16 operands, fp32 accumulate).
# ---------------------------------------------------------------------------
def _matmul_bias_kernel(x_ref, w_ref, b_ref, o_ref, acc_ref):
    @pl.when(pl.program_id(2) == 0)
    def _():
        acc_ref[...] = jnp.zeros_like(acc_ref)

    acc_ref[...] += jnp.dot(x_ref[...], w_ref[...],
                            preferred_element_type=jnp.float32)

    @pl.when(pl.program_id(2) == pl.num_programs(2) - 1)
    def _():
        o_ref[...] = (acc_ref[...] + b_ref[...]).astype(o_ref.dtype)


def _matmul_bias(x, w, b, out_dtype=jnp.float32,
                 tm_cap=256, tn_cap=512, tk_cap=512):
    """x: (M, K), w: (K, N), b: (1, N) -> (M, N) = x @ w + b."""
    M, K = x.shape
    _, N = w.shape
    tm = _pick_tile(M, tm_cap, 8)
    tn = _pick_tile(N, tn_cap, 128)
    tk = _pick_tile(K, tk_cap, 128)
    grid = (M // tm, N // tn, K // tk)
    bytes_needed = (2 * (tm * tk * x.dtype.itemsize + tk * tn * w.dtype.itemsize
                         + tn * 4 + tm * tn * 4) + tm * tn * 4)
    return pl.pallas_call(
        _matmul_bias_kernel,
        out_shape=jax.ShapeDtypeStruct((M, N), out_dtype),
        grid=grid,
        in_specs=[
            pl.BlockSpec((tm, tk), lambda i, j, k: (i, k)),
            pl.BlockSpec((tk, tn), lambda i, j, k: (k, j)),
            pl.BlockSpec((1, tn), lambda i, j, k: (0, j)),
        ],
        out_specs=pl.BlockSpec((tm, tn), lambda i, j, k: (i, j)),
        scratch_shapes=[pltpu.VMEM((tm, tn), jnp.float32)],
        compiler_params=_compiler_params(
            bytes_needed, ("parallel", "parallel", "arbitrary")),
    )(x, w, b)


# ---------------------------------------------------------------------------
# Stage 2: sequential LSTM recurrence (single grid-free kernel).
# ---------------------------------------------------------------------------
def _make_recurrence_kernel(T, Bp, Hp):
    """Refs:
      xp_ref   : (T*Bp, 4*Hp) fp32   pre-projected inputs, row = t*Bp + b
      w_hh_ref : (Hp, 4*Hp)   bf16   W_hh^T (gate-block padded)
      hs_ref   : ((T+1)*Bp, Hp) bf16 hidden states; block 0 is h_0 = 0,
                                     block t+1 holds h_t (serves as the carry)
      c_ref    : (Bp, Hp) fp32       cell state (kept fp32)
    """

    def kernel(xp_ref, w_hh_ref, hs_ref, c_ref):
        # h_0 lives in the first block of hs_ref; no separate h carry, so each
        # step has exactly one hidden-state store on the serial path.
        hs_ref[pl.ds(0, Bp), :] = jnp.zeros((Bp, Hp), dtype=hs_ref.dtype)
        c_ref[...] = jnp.zeros_like(c_ref)

        def step(t, carry):
            base = pl.multiple_of(t * Bp, Bp)
            h_prev = hs_ref[pl.ds(base, Bp), :]          # bf16 MXU operand
            gates = xp_ref[pl.ds(base, Bp), :] + jnp.dot(
                h_prev, w_hh_ref[...], preferred_element_type=jnp.float32)
            # Lane-aligned gate slices (Hp is a multiple of 128); fp32 math.
            i_g = jax.nn.sigmoid(gates[:, 0 * Hp:1 * Hp])
            f_g = jax.nn.sigmoid(gates[:, 1 * Hp:2 * Hp])
            g_g = jnp.tanh(gates[:, 2 * Hp:3 * Hp])
            o_g = jax.nn.sigmoid(gates[:, 3 * Hp:4 * Hp])
            c_new = f_g * c_ref[...] + i_g * g_g          # fp32 cell state
            h_new = o_g * jnp.tanh(c_new)
            c_ref[...] = c_new
            hs_ref[pl.ds(base + Bp, Bp), :] = h_new.astype(hs_ref.dtype)
            return carry

        # Moderate unroll: cross-step overlap for the scheduler without the
        # vreg-spill blowup of a full static unroll.
        lax.fori_loop(0, T, step, 0, unroll=min(T, 4))

    return kernel


def _lstm_recurrence(xp, w_hh_t, T, Bp, Hp):
    bytes_needed = (xp.size * 4 + w_hh_t.size * 2
                    + (T + 1) * Bp * Hp * 2 + Bp * Hp * 4)
    vmem = lambda: pl.BlockSpec(memory_space=pltpu.MemorySpace.VMEM)
    # TODO(synk): for long sequences, T-chunk xp with emit_pipeline instead of
    # keeping the whole (T*Bp, 4Hp) projection resident in VMEM.
    return pl.pallas_call(
        _make_recurrence_kernel(T, Bp, Hp),
        out_shape=jax.ShapeDtypeStruct(((T + 1) * Bp, Hp), jnp.bfloat16),
        in_specs=[vmem(), vmem()],
        out_specs=vmem(),
        scratch_shapes=[pltpu.VMEM((Bp, Hp), jnp.float32)],
        compiler_params=_compiler_params(bytes_needed),
    )(xp, w_hh_t)


# ---------------------------------------------------------------------------
# Forward pass.
# ---------------------------------------------------------------------------
def mhlstm_forward(tokens, params):
    """tokens: int32 (B, T). Returns logits (B, T, V) like the PyTorch module."""
    emb_table, w_ih, w_hh, b_ih, b_hh, w_fc, b_fc = params
    B, T = tokens.shape
    D = emb_table.shape[1]
    H = w_hh.shape[1]
    V = w_fc.shape[0]

    Bp = _round_up(B, 8)      # sublane-aligned recurrence rows
    Hp = _round_up(H, 128)    # lane-aligned gate / hidden columns
    Vp = _round_up(V, 128)    # lane-dense logits stores
    # TODO(synk): feed >=128 sequences per call in real workloads so the
    # per-step h @ W_hh matmul fills the MXU rows (Bp=8 is latency-bound).

    # Embedding lookup (data-dependent gather) stays in XLA glue.
    emb = jnp.take(emb_table, tokens, axis=0)                   # (B, T, D)
    emb_t = jnp.transpose(emb, (1, 0, 2))                       # (T, B, D)
    emb_t = jnp.pad(emb_t, ((0, 0), (0, Bp - B), (0, 0)))       # (T, Bp, D)
    x_flat = emb_t.reshape(T * Bp, D).astype(jnp.bfloat16)      # row = t*Bp+b

    def pad_gate_cols(w_t):   # (K, 4H) -> (K, 4Hp), per-gate zero padding
        Kd = w_t.shape[0]
        return jnp.pad(w_t.reshape(Kd, 4, H),
                       ((0, 0), (0, 0), (0, Hp - H))).reshape(Kd, 4 * Hp)

    w_ih_t = pad_gate_cols(w_ih.T).astype(jnp.bfloat16)              # (D, 4Hp)
    w_hh_t = jnp.pad(pad_gate_cols(w_hh.T),
                     ((0, Hp - H), (0, 0))).astype(jnp.bfloat16)     # (Hp, 4Hp)
    b_comb = jnp.pad((b_ih + b_hh).reshape(4, H),
                     ((0, 0), (0, Hp - H))).reshape(1, 4 * Hp)       # fp32
    w_fc_t = jnp.pad(w_fc.T,
                     ((0, Hp - H), (0, Vp - V))).astype(jnp.bfloat16)  # (Hp, Vp)
    b_fc_p = jnp.pad(b_fc, (0, Vp - V)).reshape(1, Vp)               # fp32

    # Stage 1: Xproj = X @ W_ih^T + (b_ih + b_hh)  (parallel-tiled GEMM).
    xp = _matmul_bias(x_flat, w_ih_t, b_comb, out_dtype=jnp.float32)

    # Stage 2: sequential recurrence (grid-free kernel).
    hs_full = _lstm_recurrence(xp, w_hh_t, T, Bp, Hp)
    hs = hs_full[Bp:]                                      # drop h_0 block

    # Stage 3: logits = Hs @ W_fc^T + b_fc  (parallel-tiled GEMM, V-tiled).
    logits = _matmul_bias(hs, w_fc_t, b_fc_p, out_dtype=jnp.float32)

    logits = logits.reshape(T, Bp, Vp)[:, :B, :V]          # drop padding
    return jnp.transpose(logits, (1, 0, 2))                # (B, T, V)


# ---------------------------------------------------------------------------
# Pure-JAX fp32 reference replicating torch.nn.LSTM semantics.
# ---------------------------------------------------------------------------
def mhlstm_reference(tokens, params):
    emb_table, w_ih, w_hh, b_ih, b_hh, w_fc, b_fc = params
    B, T = tokens.shape
    H = w_hh.shape[1]
    emb = jnp.take(emb_table, tokens, axis=0)              # (B, T, D)
    xs = jnp.transpose(emb, (1, 0, 2))                     # (T, B, D)

    def step(carry, x_t):
        h, c = carry
        gates = x_t @ w_ih.T + b_ih + h @ w_hh.T + b_hh
        i_g, f_g, g_g, o_g = jnp.split(gates, 4, axis=-1)
        i_g = jax.nn.sigmoid(i_g)
        f_g = jax.nn.sigmoid(f_g)
        g_g = jnp.tanh(g_g)
        o_g = jax.nn.sigmoid(o_g)
        c_new = f_g * c + i_g * g_g
        h_new = o_g * jnp.tanh(c_new)
        return (h_new, c_new), h_new

    h0 = jnp.zeros((B, H), jnp.float32)
    c0 = jnp.zeros((B, H), jnp.float32)
    (_, _), hs = lax.scan(step, (h0, c0), xs)              # (T, B, H)
    logits = hs @ w_fc.T + b_fc                            # (T, B, V)
    return jnp.transpose(logits, (1, 0, 2))                # (B, T, V)


def make_params(key, vocab_size, input_dim, hidden_size):
    ks = jax.random.split(key, 7)
    scale = 0.1
    emb_table = scale * jax.random.normal(ks[0], (vocab_size, input_dim), jnp.float32)
    w_ih = scale * jax.random.normal(ks[1], (4 * hidden_size, input_dim), jnp.float32)
    w_hh = scale * jax.random.normal(ks[2], (4 * hidden_size, hidden_size), jnp.float32)
    b_ih = scale * jax.random.normal(ks[3], (4 * hidden_size,), jnp.float32)
    b_hh = scale * jax.random.normal(ks[4], (4 * hidden_size,), jnp.float32)
    w_fc = scale * jax.random.normal(ks[5], (vocab_size, hidden_size), jnp.float32)
    b_fc = scale * jax.random.normal(ks[6], (vocab_size,), jnp.float32)
    return (emb_table, w_ih, w_hh, b_ih, b_hh, w_fc, b_fc)


if __name__ == "__main__":
    # Small shapes consistent with the module: batch=2, seq=8,
    # vocab_size=32, input_dim=64, hidden_size=32, num_layers=1.
    B, T = 2, 8
    VOCAB, D, H = 32, 64, 32

    key = jax.random.PRNGKey(0)
    k_tok, k_par = jax.random.split(key)
    tokens = jax.random.randint(k_tok, (B, T), 0, VOCAB, dtype=jnp.int32)
    params = make_params(k_par, VOCAB, D, H)

    out = jax.block_until_ready(mhlstm_forward(tokens, params))
    ref = jax.block_until_ready(mhlstm_reference(tokens, params))

    assert out.shape == (B, T, VOCAB)
    # bf16 MXU operands vs fp32 reference -> small, bounded numeric drift.
    assert jnp.allclose(out, ref, atol=3e-2, rtol=3e-2), (
        f"max abs err {jnp.max(jnp.abs(out - ref))}")
    print("KERNEL_OK")
</pallas_src>

<mosaic_0001>
module attributes {stable_mosaic.version = 11 : i64} {
  func.func @_matmul_bias_kernel(%arg0: i32, %arg1: i32, %arg2: i32, %arg3: memref<64x64xbf16, #tpu.memory_space<vmem>>, %arg4: memref<64x512xbf16, #tpu.memory_space<vmem>>, %arg5: memref<1x512xf32, #tpu.memory_space<vmem>>, %arg6: memref<64x512xf32, #tpu.memory_space<vmem>>, %arg7: memref<64x512xf32, #tpu.memory_space<vmem>>) attributes {dimension_semantics = [#tpu.dimension_semantics<parallel>, #tpu.dimension_semantics<parallel>, #tpu.dimension_semantics<arbitrary>], iteration_bounds = array<i64: 1, 1, 1>, scalar_prefetch = 0 : i64, scratch_operands = 1 : i64, tpu.core_type = #tpu.core_type<tc>, window_params = [{transform_indices = @transform_0, window_bounds = array<i64: 64, 64>}, {transform_indices = @transform_1, window_bounds = array<i64: 64, 512>}, {transform_indices = @transform_2, window_bounds = array<i64: 1, 512>}, {transform_indices = @transform_3, window_bounds = array<i64: 64, 512>}]} {
    %c0_i32 = arith.constant 0 : i32
    %0 = arith.cmpi eq, %arg2, %c0_i32 : i32
    %1 = arith.extui %0 : i1 to i32
    %c0_i32_0 = arith.constant 0 : i32
    %2 = arith.cmpi ne, %1, %c0_i32_0 : i32
    scf.if %2 {
      %cst_10 = arith.constant 0.000000e+00 : f32
      %12 = vector.broadcast %cst_10 : f32 to vector<64x512xf32>
      %c0_11 = arith.constant 0 : index
      %c0_12 = arith.constant 0 : index
      %13 = vector.load %arg7[%c0_11, %c0_12] : memref<64x512xf32, #tpu.memory_space<vmem>>, vector<64x512xf32>
      tpu.vector_store %arg7[%c0_11, %c0_12], %12 {strides = array<i32>} : memref<64x512xf32, #tpu.memory_space<vmem>>, vector<64x512xf32>,
    } else {
    }
    %c0 = arith.constant 0 : index
    %c0_1 = arith.constant 0 : index
    %3 = vector.load %arg7[%c0, %c0_1] : memref<64x512xf32, #tpu.memory_space<vmem>>, vector<64x512xf32>
    %c0_2 = arith.constant 0 : index
    %c0_3 = arith.constant 0 : index
    %4 = vector.load %arg3[%c0_2, %c0_3] : memref<64x64xbf16, #tpu.memory_space<vmem>>, vector<64x64xbf16>
    %c0_4 = arith.constant 0 : index
    %c0_5 = arith.constant 0 : index
    %5 = vector.load %arg4[%c0_4, %c0_5] : memref<64x512xbf16, #tpu.memory_space<vmem>>, vector<64x512xbf16>
    %cst = arith.constant dense<0.000000e+00> : vector<64x512xf32>
    %6 = tpu.matmul %4, %5, %cst {dimension_numbers = #tpu.dot_dimension_numbers<[1], [0], [0], [1], [0, 0, 1, 1], [], []>} : vector<64x64xbf16>, vector<64x512xbf16>, vector<64x512xf32> -> vector<64x512xf32>
    %7 = arith.addf %3, %6 : vector<64x512xf32>
    %c0_6 = arith.constant 0 : index
    %c0_7 = arith.constant 0 : index
    %8 = vector.load %arg7[%c0_6, %c0_7] : memref<64x512xf32, #tpu.memory_space<vmem>>, vector<64x512xf32>
    tpu.vector_store %arg7[%c0_6, %c0_7], %7 {strides = array<i32>} : memref<64x512xf32, #tpu.memory_space<vmem>>, vector<64x512xf32>,
    %c0_i32_8 = arith.constant 0 : i32
    %9 = arith.cmpi eq, %arg2, %c0_i32_8 : i32
    %10 = arith.extui %9 : i1 to i32
    %c0_i32_9 = arith.constant 0 : i32
    %11 = arith.cmpi ne, %10, %c0_i32_9 : i32
    scf.if %11 {
      %c0_10 = arith.constant 0 : index
      %c0_11 = arith.constant 0 : index
      %12 = vector.load %arg7[%c0_10, %c0_11] : memref<64x512xf32, #tpu.memory_space<vmem>>, vector<64x512xf32>
      %c0_12 = arith.constant 0 : index
      %c0_13 = arith.constant 0 : index
      %13 = vector.load %arg5[%c0_12, %c0_13] : memref<1x512xf32, #tpu.memory_space<vmem>>, vector<1x512xf32>
      %14 = vector.broadcast %13 : vector<1x512xf32> to vector<64x512xf32>
      %15 = arith.addf %12, %14 : vector<64x512xf32>
      %c0_14 = arith.constant 0 : index
      %c0_15 = arith.constant 0 : index
      %16 = vector.load %arg6[%c0_14, %c0_15] : memref<64x512xf32, #tpu.memory_space<vmem>>, vector<64x512xf32>
      tpu.vector_store %arg6[%c0_14, %c0_15], %15 {strides = array<i32>} : memref<64x512xf32, #tpu.memory_space<vmem>>, vector<64x512xf32>,
    } else {
    }
    return
  }
  func.func @transform_0(%arg0: i32, %arg1: i32, %arg2: i32) -> (i32, i32) {
    %c0_i32 = arith.constant 0 : i32
    return %arg0, %arg2 : i32, i32
  }
  func.func @transform_1(%arg0: i32, %arg1: i32, %arg2: i32) -> (i32, i32) {
    %c0_i32 = arith.constant 0 : i32
    return %arg2, %arg1 : i32, i32
  }
  func.func @transform_2(%arg0: i32, %arg1: i32, %arg2: i32) -> (i32, i32) {
    %c0_i32 = arith.constant 0 : i32
    %c0_i32_0 = arith.constant 0 : i32
    return %c0_i32, %arg1 : i32, i32
  }
  func.func @transform_3(%arg0: i32, %arg1: i32, %arg2: i32) -> (i32, i32) {
    %c0_i32 = arith.constant 0 : i32
    return %arg0, %arg1 : i32, i32
  }
}

</mosaic_0001>

<bundles_post_ra>
// kernel: tpu_custom_call.1
= control target key start
LH: loop header
LB: loop body
LE: loop exit
PB: predicated region body
PF: predicated region fallthrough
CT: control target
= control target key end

     0   :  { %8 = vsyncpa [#allocation4], 0  ;;  %s901_s0 = inlined_call_operand.hbm [shape: bf16[64,64], index: 0, kind: input, shape index: {}]   ;;  %s902_s1 = inlined_call_operand.hbm [shape: bf16[64,512], index: 1, kind: input, shape index: {}]   ;;  %s903_s2 = inlined_call_operand.hbm [shape: f32[1,512], index: 2, kind: input, shape index: {}]   ;;  %s904_s3 = inlined_call_operand.hbm [shape: f32[64,512], index: 3, kind: output, shape index: {}]  }
   0x1   :  { %9 = vsyncpa [#allocation7], 0  ;;  %s28_s14 = sshll.u32 %s902_s1, 4  ;;  %s29_s14 = int_to_ptr.hbm [resolvable:$true] %s28_s14 }
   0x2   :  { %10 = vsyncpa [#allocation5], 0  ;;  %s803_s15 = smov [#allocation6]   ;;  %s15_s19 = sshll.u32 %s901_s0, 4  ;;  %s16_s19 = int_to_ptr.hbm [resolvable:$true] %s15_s19 }
   0x3   :  { %s30_s16 = sshll.u32 %s803_s15, 4  ;;  %s804_s20 = smov 256   ;;  %s31_s16 = int_to_ptr.vmem [resolvable:$true] %s30_s16 }
   0x4   :  { %s805_s21 = smov 16   ;;  %s806_s22 = smov [#allocation3]  }
   0x5   :  { %36 = dma.hbm_to_vmem [thread:$0]  %s29_s14, 2048, %s31_s16, [#allocation7], %s804_s20, %s804_s20, %s805_s21  }
   0x6   :  { %s17_s23 = sshll.u32 %s806_s22, 4  ;;  %s807_s24 = smov 64   ;;  %s18_s23 = int_to_ptr.vmem [resolvable:$true] %s17_s23 }
   0x7   :  { %s808_s25 = smov 4   ;;  %s42_s27 = sshll.u32 %s903_s2, 4  ;;  %s43_s27 = int_to_ptr.hbm [resolvable:$true] %s42_s27 }
   0x8   :  { %23 = dma.hbm_to_vmem [thread:$0]  %s16_s19, 512, %s18_s23, [#allocation4], %s807_s24, %s807_s24, %s808_s25  }
   0x9   :  { %s809_s28 = smov [#allocation8]  }
   0xa   :  { %s44_s29 = sshll.u32 %s809_s28, 4  ;;  %s45_s29 = int_to_ptr.vmem [resolvable:$true] %s44_s29 }
   0xb   :  { %47 = dma.hbm_to_vmem [thread:$0]  %s43_s27, 64, %s45_s29, [#allocation7]  }
   0xc   :  { %797 = dma.done.wait [#allocation4], 512  }
   0xd   :  { %798 = vsyncadd [#allocation4], 4294966784 }
   0xe   :  { %799 = dma.done.wait [#allocation7], 2112  }
   0xf   :  { %800 = vsyncadd [#allocation7], 4294965184  ;;  %v641_v0 = vld [vmem:[#allocation6 + $0x60] sm:$0xf]  ;;  %v689_v1 = vld [vmem:[#allocation6 + $0x6c] sm:$0xf0] }
  0x10   :  { %v687_v2 = vld [vmem:[#allocation6 + $0x64] sm:$0xf]  ;;  %v642_v3 = vor.u32 %v689_v1, %v641_v0  ;;  %v643_v4 = vld [vmem:[#allocation6 + $0x70] sm:$0xf0]  ;;  %v649_v5 = vld [vmem:[#allocation6 + $0x68] sm:$0xf] }
  0x11   :  { %v690_v6 = vld [vmem:[#allocation6 + $0x74] sm:$0xf0]  ;;  %v646_v7 = vor.u32 %v687_v2, %v643_v4  ;;  %v688_v9 = vld [vmem:[#allocation6 + $0x6c] sm:$0xf]  ;;  %v651_v10 = vld [vmem:[#allocation6 + $0x78] sm:$0xf0] }
  0x12   :  { %v650_v8 = vor.u32 %v690_v6, %v649_v5  ;;  %v625_v11 = vld [vmem:[#allocation6 + $0x40] sm:$0xf]  ;;  %270 = vmatpush.bf16.msra.mxu0 %v642_v3  ;;  %v654_v12 = vor.u32 %v688_v9, %v651_v10  ;;  %v685_v13 = vld [vmem:[#allocation6 + $0x4c] sm:$0xf0]  ;;  %v683_v14 = vld [vmem:[#allocation6 + $0x44] sm:$0xf] }
  0x13   :  { %v627_v15 = vld [vmem:[#allocation6 + $0x50] sm:$0xf0]  ;;  %299 = vmatpush.bf16.msra.mxu1 %v646_v7  ;;  %v626_v16 = vor.u32 %v685_v13, %v625_v11  ;;  %v633_v18 = vld [vmem:[#allocation6 + $0x48] sm:$0xf]  ;;  %v686_v19 = vld [vmem:[#allocation6 + $0x54] sm:$0xf0] }
  0x14   :  { %328 = vmatpush.bf16.msra.mxu2 %v650_v8  ;;  %v630_v17 = vor.u32 %v683_v14, %v627_v15  ;;  %v684_v20 = vld [vmem:[#allocation6 + $0x4c] sm:$0xf]  ;;  %357 = vmatpush.bf16.msra.mxu3 %v654_v12  ;;  %v634_v21 = vor.u32 %v686_v19, %v633_v18  ;;  %v635_v22 = vld [vmem:[#allocation6 + $0x58] sm:$0xf0]  ;;  %v609_v23 = vld [vmem:[#allocation6 + $0x20] sm:$0xf] }
  0x15   :  { %v681_v24 = vld [vmem:[#allocation6 + $0x2c] sm:$0xf0]  ;;  %v638_v25 = vor.u32 %v684_v20, %v635_v22  ;;  %v679_v26 = vld [vmem:[#allocation6 + $0x24] sm:$0xf]  ;;  %v611_v27 = vld [vmem:[#allocation6 + $0x30] sm:$0xf0] }
  0x16   :  { %v617_v28 = vld [vmem:[#allocation6 + $0x28] sm:$0xf]  ;;  %271 = vmatpush.bf16.msra.mxu0 %v626_v16  ;;  %v610_v29 = vor.u32 %v681_v24, %v609_v23  ;;  %v682_v30 = vld [vmem:[#allocation6 + $0x34] sm:$0xf0]  ;;  %v680_v31 = vld [vmem:[#allocation6 + $0x2c] sm:$0xf]  ;;  %v614_v33 = vor.u32 %v679_v26, %v611_v27 }
  0x17   :  { %v619_v32 = vld [vmem:[#allocation6 + $0x38] sm:$0xf0]  ;;  %300 = vmatpush.bf16.msra.mxu1 %v630_v17  ;;  %v618_v34 = vor.u32 %v682_v30, %v617_v28  ;;  %v593_v35 = vld [vmem:[#allocation6] sm:$0xf]  ;;  %v677_v36 = vld [vmem:[#allocation6 + $0xc] sm:$0xf0] }
  0x18   :  { %329 = vmatpush.bf16.msra.mxu2 %v634_v21  ;;  %v675_v37 = vld [vmem:[#allocation6 + $0x4] sm:$0xf]  ;;  %358 = vmatpush.bf16.msra.mxu3 %v638_v25  ;;  %v622_v38 = vor.u32 %v680_v31, %v619_v32  ;;  %v595_v39 = vld [vmem:[#allocation6 + $0x10] sm:$0xf0]  ;;  %v601_v40 = vld [vmem:[#allocation6 + $0x8] sm:$0xf]  ;;  %v594_v44 = vor.u32 %v677_v36, %v593_v35 }
  0x19   :  { %v678_v41 = vld [vmem:[#allocation6 + $0x14] sm:$0xf0]  ;;  %v676_v42 = vld [vmem:[#allocation6 + $0xc] sm:$0xf]  ;;  %v603_v43 = vld [vmem:[#allocation6 + $0x18] sm:$0xf0]  ;;  %v598_v45 = vor.u32 %v675_v37, %v595_v39 }
  0x1a   :  { %272 = vmatpush.bf16.msra.mxu0 %v610_v29  ;;  %v602_v46 = vor.u32 %v678_v41, %v601_v40  ;;  %v606_v47 = vor.u32 %v676_v42, %v603_v43  ;;  %v671_v48 = vld [vmem:[#allocation3] sm:$0xff]  ;;  %vm253_vm0 = vcmask 523264   ;;  %v672_v49 = vld [vmem:[#allocation3 + $0x8] sm:$0xff]  ;;  %v673_v50 = vld [vmem:[#allocation3 + $0x10] sm:$0xff]  ;;  %s810_s0 = smov [#allocation9]   ;;  %s561_s5 = sshll.u32 %s904_s3, 4  ;;  %s562_s5 = int_to_ptr.hbm [resolvable:$true] %s561_s5 }
  0x1b   :  { %301 = vmatpush.bf16.msra.mxu1 %v614_v33  ;;  %v674_v51 = vld [vmem:[#allocation3 + $0x18] sm:$0xff]  ;;  %v481_v52 = vld [vmem:[#allocation8] sm:$0xf]  ;;  %s559_s2 = sshll.u32 %s810_s0, 4  ;;  %s811_s6 = smov 512   ;;  %s560_s2 = int_to_ptr.vmem [resolvable:$true] %s559_s2 }
  0x1c   :  { %330 = vmatpush.bf16.msra.mxu2 %v618_v34  ;;  %359 = vmatpush.bf16.msra.mxu3 %v622_v38  ;;  %v858_v53 = vperm.slane %v481_v52, 0  ;;  %v860_v54 = vperm.slane %v481_v52, 1  ;;  %v864_v59 = vperm.slane %v481_v52, 2  ;;  %v866_v60 = vperm.slane %v481_v52, 3  ;;  %s812_s7 = smov 32  }
  0x1e   :  { %273 = vmatpush.bf16.msra.mxu0 %v594_v44 }
  0x1f   :  { %302 = vmatpush.bf16.msra.mxu1 %v598_v45 }
  0x20   :  { %331 = vmatpush.bf16.msra.mxu2 %v602_v46  ;;  %360 = vmatpush.bf16.msra.mxu3 %v606_v47 }
  0x21   :  { %655 = vmatmul.msk.bf16.vlgmr.msra.gmra.mxu0 %vm253_vm0, %v671_v48 }
  0x22   :  { %659 = vmatmul.msk.bf16.vlgmr.msra.gmra.mxu1 %vm253_vm0, %v671_v48 }
  0x23   :  { %663 = vmatmul.msk.bf16.vlgmr.msra.gmra.mxu2 %vm253_vm0, %v671_v48  ;;  %667 = vmatmul.msk.bf16.vlgmr.msra.gmra.mxu3 %vm253_vm0, %v671_v48 }
  0x31   :  { %656 = vmatmul.msk.bf16.gmra.mxu0 %vm253_vm0, %v672_v49 }
  0x32   :  { %660 = vmatmul.msk.bf16.gmra.mxu1 %vm253_vm0, %v672_v49 }
  0x33   :  { %664 = vmatmul.msk.bf16.gmra.mxu2 %vm253_vm0, %v672_v49  ;;  %668 = vmatmul.msk.bf16.gmra.mxu3 %vm253_vm0, %v672_v49 }
  0x41   :  { %657 = vmatmul.msk.bf16.gmra.mxu0 %vm253_vm0, %v673_v50 }
  0x42   :  { %661 = vmatmul.msk.bf16.gmra.mxu1 %vm253_vm0, %v673_v50 }
  0x43   :  { %665 = vmatmul.msk.bf16.gmra.mxu2 %vm253_vm0, %v673_v50  ;;  %669 = vmatmul.msk.bf16.gmra.mxu3 %vm253_vm0, %v673_v50 }
  0x51   :  { %658 = vmatmul.msk.bf16.gmra.mxu0 %vm253_vm0, %v674_v51 }
  0x52   :  { %662 = vmatmul.msk.bf16.gmra.mxu1 %vm253_vm0, %v674_v51 }
  0x53   :  { %666 = vmatmul.msk.bf16.gmra.mxu2 %vm253_vm0, %v674_v51  ;;  %670 = vmatmul.msk.bf16.gmra.mxu3 %vm253_vm0, %v674_v51 }
  0x9e   :  { %v275_v55 = vpop.f32.mrf.mxu0 }
  0x9f   :  { %v491_v56 = vadd.f32 %v858_v53, %v275_v55  ;;  %v304_v57 = vpop.f32.mrf.mxu1 }
  0xa0   :  { %v492_v58 = vadd.f32 %v860_v54, %v304_v57 }
  0xa1   :  { %523 = vst [vmem:[#allocation9] sm:$0xff] %v491_v56 }
  0xa2   :  { %524 = vst [vmem:[#allocation9 + $0x8] sm:$0xff] %v492_v58 }
  0xa6   :  { %v333_v61 = vpop.f32.mrf.mxu2  ;;  %v362_v63 = vpop.f32.mrf.mxu3 }
  0xa7   :  { %v493_v62 = vadd.f32 %v864_v59, %v333_v61  ;;  %v277_v0 = vpop.f32.mrf.mxu0  ;;  %v494_v1 = vadd.f32 %v866_v60, %v362_v63  ;;  %v306_v3 = vpop.f32.mrf.mxu1 }
  0xa8   :  { %v495_v2 = vadd.f32 %v858_v53, %v277_v0  ;;  %v496_v4 = vadd.f32 %v860_v54, %v306_v3 }
  0xa9   :  { %525 = vst [vmem:[#allocation9 + $0x10] sm:$0xff] %v493_v62 }
  0xaa   :  { %526 = vst [vmem:[#allocation9 + $0x18] sm:$0xff] %v494_v1 }
  0xab   :  { %527 = vst [vmem:[#allocation9 + $0x20] sm:$0xff] %v495_v2 }
  0xac   :  { %528 = vst [vmem:[#allocation9 + $0x28] sm:$0xff] %v496_v4 }
  0xae   :  { %v335_v5 = vpop.f32.mrf.mxu2  ;;  %v364_v7 = vpop.f32.mrf.mxu3 }
  0xaf   :  { %v497_v6 = vadd.f32 %v864_v59, %v335_v5  ;;  %v280_v8 = vpop.f32.mrf.mxu0  ;;  %v498_v9 = vadd.f32 %v866_v60, %v364_v7  ;;  %v309_v11 = vpop.f32.mrf.mxu1 }
  0xb0   :  { %v499_v10 = vadd.f32 %v858_v53, %v280_v8  ;;  %v500_v12 = vadd.f32 %v860_v54, %v309_v11 }
  0xb1   :  { %529 = vst [vmem:[#allocation9 + $0x30] sm:$0xff] %v497_v6 }
  0xb2   :  { %530 = vst [vmem:[#allocation9 + $0x38] sm:$0xff] %v498_v9 }
  0xb3   :  { %531 = vst [vmem:[#allocation9 + $0x40] sm:$0xff] %v499_v10 }
  0xb4   :  { %532 = vst [vmem:[#allocation9 + $0x48] sm:$0xff] %v500_v12 }
  0xb6   :  { %v338_v13 = vpop.f32.mrf.mxu2  ;;  %v367_v15 = vpop.f32.mrf.mxu3 }
  0xb7   :  { %v501_v14 = vadd.f32 %v864_v59, %v338_v13  ;;  %v282_v16 = vpop.f32.mrf.mxu0  ;;  %v502_v17 = vadd.f32 %v866_v60, %v367_v15  ;;  %v311_v19 = vpop.f32.mrf.mxu1 }
  0xb8   :  { %v503_v18 = vadd.f32 %v858_v53, %v282_v16  ;;  %v504_v20 = vadd.f32 %v860_v54, %v311_v19 }
  0xb9   :  { %533 = vst [vmem:[#allocation9 + $0x50] sm:$0xff] %v501_v14 }
  0xba   :  { %534 = vst [vmem:[#allocation9 + $0x58] sm:$0xff] %v502_v17 }
  0xbb   :  { %535 = vst [vmem:[#allocation9 + $0x60] sm:$0xff] %v503_v18 }
  0xbc   :  { %536 = vst [vmem:[#allocation9 + $0x68] sm:$0xff] %v504_v20 }
  0xbe   :  { %v340_v21 = vpop.f32.mrf.mxu2  ;;  %v369_v23 = vpop.f32.mrf.mxu3 }
  0xbf   :  { %v505_v22 = vadd.f32 %v864_v59, %v340_v21  ;;  %v285_v24 = vpop.f32.mrf.mxu0  ;;  %v506_v25 = vadd.f32 %v866_v60, %v369_v23  ;;  %v314_v27 = vpop.f32.mrf.mxu1 }
  0xc0   :  { %v507_v26 = vadd.f32 %v858_v53, %v285_v24  ;;  %v508_v28 = vadd.f32 %v860_v54, %v314_v27 }
  0xc1   :  { %537 = vst [vmem:[#allocation9 + $0x70] sm:$0xff] %v505_v22 }
  0xc2   :  { %538 = vst [vmem:[#allocation9 + $0x78] sm:$0xff] %v506_v25 }
  0xc3   :  { %539 = vst [vmem:[#allocation9 + $0x80] sm:$0xff] %v507_v26 }
  0xc4   :  { %540 = vst [vmem:[#allocation9 + $0x88] sm:$0xff] %v508_v28 }
  0xc6   :  { %v343_v29 = vpop.f32.mrf.mxu2  ;;  %v372_v31 = vpop.f32.mrf.mxu3 }
  0xc7   :  { %v509_v30 = vadd.f32 %v864_v59, %v343_v29  ;;  %v287_v32 = vpop.f32.mrf.mxu0  ;;  %v510_v33 = vadd.f32 %v866_v60, %v372_v31  ;;  %v316_v35 = vpop.f32.mrf.mxu1 }
  0xc8   :  { %v511_v34 = vadd.f32 %v858_v53, %v287_v32  ;;  %v512_v36 = vadd.f32 %v860_v54, %v316_v35 }
  0xc9   :  { %541 = vst [vmem:[#allocation9 + $0x90] sm:$0xff] %v509_v30 }
  0xca   :  { %542 = vst [vmem:[#allocation9 + $0x98] sm:$0xff] %v510_v33 }
  0xcb   :  { %543 = vst [vmem:[#allocation9 + $0xa0] sm:$0xff] %v511_v34 }
  0xcc   :  { %544 = vst [vmem:[#allocation9 + $0xa8] sm:$0xff] %v512_v36 }
  0xce   :  { %v345_v37 = vpop.f32.mrf.mxu2  ;;  %v374_v39 = vpop.f32.mrf.mxu3 }
  0xcf   :  { %v513_v38 = vadd.f32 %v864_v59, %v345_v37  ;;  %v290_v40 = vpop.f32.mrf.mxu0  ;;  %v514_v41 = vadd.f32 %v866_v60, %v374_v39  ;;  %v319_v43 = vpop.f32.mrf.mxu1 }
  0xd0   :  { %v515_v42 = vadd.f32 %v858_v53, %v290_v40  ;;  %v516_v44 = vadd.f32 %v860_v54, %v319_v43 }
  0xd1   :  { %545 = vst [vmem:[#allocation9 + $0xb0] sm:$0xff] %v513_v38 }
  0xd2   :  { %546 = vst [vmem:[#allocation9 + $0xb8] sm:$0xff] %v514_v41 }
  0xd3   :  { %547 = vst [vmem:[#allocation9 + $0xc0] sm:$0xff] %v515_v42 }
  0xd4   :  { %548 = vst [vmem:[#allocation9 + $0xc8] sm:$0xff] %v516_v44 }
  0xd6   :  { %v348_v45 = vpop.f32.mrf.mxu2  ;;  %v377_v47 = vpop.f32.mrf.mxu3 }
  0xd7   :  { %v517_v46 = vadd.f32 %v864_v59, %v348_v45  ;;  %v292_v48 = vpop.f32.mrf.mxu0  ;;  %v518_v49 = vadd.f32 %v866_v60, %v377_v47  ;;  %v321_v51 = vpop.f32.mrf.mxu1 }
  0xd8   :  { %v519_v50 = vadd.f32 %v858_v53, %v292_v48  ;;  %v520_v52 = vadd.f32 %v860_v54, %v321_v51 }
  0xd9   :  { %549 = vst [vmem:[#allocation9 + $0xd0] sm:$0xff] %v517_v46 }
  0xda   :  { %550 = vst [vmem:[#allocation9 + $0xd8] sm:$0xff] %v518_v49 }
  0xdb   :  { %551 = vst [vmem:[#allocation9 + $0xe0] sm:$0xff] %v519_v50 }
  0xdc   :  { %552 = vst [vmem:[#allocation9 + $0xe8] sm:$0xff] %v520_v52 }
  0xde   :  { %v350_v55 = vpop.f32.mrf.mxu2  ;;  %v379_v57 = vpop.f32.mrf.mxu3 }
  0xdf   :  { %v521_v56 = vadd.f32 %v864_v59, %v350_v55  ;;  %v522_v53 = vadd.f32 %v866_v60, %v379_v57 }
  0xe1   :  { %553 = vst [vmem:[#allocation9 + $0xf0] sm:$0xff] %v521_v56 }
  0xe2   :  { %554 = vst [vmem:[#allocation9 + $0xf8] sm:$0xff] %v522_v53 }
  0xe3   :  { %567 = dma.vmem_to_hbm [thread:$0]  %s560_s2, 4096, %s562_s5, [#allocation5], %s811_s6, %s811_s6, %s812_s7  }
  0xe4   :  { %801 = dma.done.wait [#allocation5], 4096  }
  0xe5   :  { %802 = vsyncadd [#allocation5], 4294963200 }
  0xe6   :  { %572 = vsyncpa [#allocation4], 1 }
  0xe7   :  { %573 = vsyncpa [#allocation7], 1 }
  0xe8   :  { %574 = vsyncpa [#allocation5], 1 }

</bundles_post_ra>
